<compile_context>
chip_gen: v7x
topology: tpu7x:2x2x1
jax: 0.10.0
libtpu: 0.0.40
codegen_flags: <defaults>
</compile_context>

<pallas_src>
import numpy as np
import jax
import jax.numpy as jnp
from jax.experimental import pallas as pl
from jax.experimental.pallas import tpu as pltpu


def _tpu_vmem_and_cores():
    """Return (per-core VMEM capacity in bytes, #TensorCores sharing the grid)."""
    vmem_cap = 128 << 20          # v5e / v6e default
    num_tc = 1
    try:
        info = pltpu.get_tpu_info()
        vmem_cap = int(getattr(info, "vmem_capacity_bytes", vmem_cap))
    except Exception:
        pass
    try:
        kind = jax.devices()[0].device_kind.lower()
        if "v7" in kind:          # 2 TensorCores per chip, 64 MiB VMEM each
            num_tc = 2
    except Exception:
        pass
    return vmem_cap, num_tc


def _pick_blocks(B, C, W, itemsize, vmem_budget_bytes, num_tc):
    """Pick (block_b, block_w): the largest tiles whose double-buffered in+out
    working set (4 * tile bytes) fits the budget, while leaving >= num_tc grid
    steps whenever that is achievable (megacore sharding on v7x)."""

    def fits(bb, bw):
        # BlockSpec double-buffers BOTH the input and the output tile.
        return 4 * bb * C * bw * itemsize <= vmem_budget_bytes

    # Candidate W blocks: full W is always legal; sub-blocks only when the
    # (8,128) tiling rules keep both block shapes aligned and the output
    # lane-dense (C % 128 == 0 and bw % 128 == 0).
    bw_cands = [W]
    if C % 128 == 0:
        bw_cands += [d for d in range(128, W, 128) if W % d == 0]
    bw_cands = sorted(set(bw_cands), reverse=True)      # biggest first

    b_divs = sorted((d for d in range(1, B + 1) if B % d == 0), reverse=True)

    for bw in bw_cands:
        for bb in b_divs:
            if not fits(bb, bw):
                continue
            steps = (B // bb) * (W // bw)
            if num_tc > 1 and steps < num_tc and B * (W // bw) >= num_tc:
                continue          # shrink bb so every TensorCore gets work
            return bb, bw
    # Nothing fit the budget: smallest legal tile (still correct; the VMEM
    # limit passed to the compiler is sized from this choice).
    return 1, bw_cands[-1]


def _im2seq_kernel(x_ref, o_ref):
    # x_ref: (bb, C, bw)  ->  o_ref: (bb, bw, C); one batched XLU transpose.
    o_ref[...] = jnp.transpose(x_ref[...], (0, 2, 1))


def im2seq(x, block_b=None, block_w=None):
    """Pallas TPU implementation of Im2Seq.forward: (B, C, 1, W) -> (B, W, C)."""
    B, C, H, W = x.shape
    assert H == 1, "Im2Seq requires H == 1"
    x3 = x.reshape(B, C, W)                 # squeeze(2): free metadata reshape

    itemsize = x.dtype.itemsize
    vmem_cap, num_tc = _tpu_vmem_and_cores()
    # Budget half the physical VMEM for the pipeline's working set
    # (v5e/v6e: 64 MiB, v7x: 32 MiB); leaves headroom for compiler scratch.
    vmem_budget = vmem_cap // 2

    if block_b is None or block_w is None:
        bb, bw = _pick_blocks(B, C, W, itemsize, vmem_budget, num_tc)
        block_b = bb if block_b is None else block_b
        block_w = bw if block_w is None else block_w
    assert B % block_b == 0 and W % block_w == 0

    working = 4 * block_b * C * block_w * itemsize
    vmem_limit = int(min(vmem_cap, max(working + (8 << 20), 32 << 20)))

    grid = (B // block_b, W // block_w)
    return pl.pallas_call(
        _im2seq_kernel,
        out_shape=jax.ShapeDtypeStruct((B, W, C), x.dtype),
        grid_spec=pltpu.PrefetchScalarGridSpec(
            num_scalar_prefetch=0,
            grid=grid,
            in_specs=[pl.BlockSpec((block_b, C, block_w),
                                   lambda i, j: (i, 0, j))],
            out_specs=pl.BlockSpec((block_b, block_w, C),
                                   lambda i, j: (i, j, 0)),
        ),
        compiler_params=pltpu.CompilerParams(
            dimension_semantics=("parallel", "parallel"),
            vmem_limit_bytes=vmem_limit),
        cost_estimate=pl.CostEstimate(
            flops=0, transcendentals=0,
            bytes_accessed=2 * B * C * W * itemsize),
    )(x3)


def reference_im2seq(x):
    """Pure-JAX reference mirroring the PyTorch forward."""
    B, C, H, W = x.shape
    assert H == 1
    return jnp.transpose(x.reshape(B, C, W), (0, 2, 1))


if __name__ == "__main__":
    # Small shapes consistent with the module: (B, C, H=1, W).
    # C is last in the output -> lane-dense stores (C = 128); W = seq length.
    B, C, H, W = 2, 128, 1, 64
    key = jax.random.PRNGKey(0)
    x = jax.random.normal(key, (B, C, H, W), dtype=jnp.float32)

    out = jax.block_until_ready(im2seq(x))
    ref = reference_im2seq(x)
    np.testing.assert_array_equal(np.asarray(out), np.asarray(ref))

    print("KERNEL_OK")
</pallas_src>

<mosaic_0001>
module attributes {stable_mosaic.version = 11 : i64} {
  func.func @_im2seq_kernel(%arg0: i32, %arg1: i32, %arg2: memref<2x128x64xf32, #tpu.memory_space<vmem>>, %arg3: memref<2x64x128xf32, #tpu.memory_space<vmem>>) attributes {dimension_semantics = [#tpu.dimension_semantics<parallel>, #tpu.dimension_semantics<parallel>], iteration_bounds = array<i64: 1, 1>, scalar_prefetch = 0 : i64, scratch_operands = 0 : i64, tpu.core_type = #tpu.core_type<tc>, window_params = [{transform_indices = @transform_0, window_bounds = array<i64: 2, 128, 64>}, {transform_indices = @transform_1, window_bounds = array<i64: 2, 64, 128>}]} {
    %c0 = arith.constant 0 : index
    %c0_0 = arith.constant 0 : index
    %c0_1 = arith.constant 0 : index
    %0 = vector.load %arg2[%c0, %c0_0, %c0_1] : memref<2x128x64xf32, #tpu.memory_space<vmem>>, vector<2x128x64xf32>
    %1 = tpu.transpose %0, [0, 2, 1] : vector<2x128x64xf32> -> vector<2x64x128xf32>
    %c0_2 = arith.constant 0 : index
    %c0_3 = arith.constant 0 : index
    %c0_4 = arith.constant 0 : index
    %2 = vector.load %arg3[%c0_2, %c0_3, %c0_4] : memref<2x64x128xf32, #tpu.memory_space<vmem>>, vector<2x64x128xf32>
    tpu.vector_store %arg3[%c0_2, %c0_3, %c0_4], %1 {strides = array<i32>} : memref<2x64x128xf32, #tpu.memory_space<vmem>>, vector<2x64x128xf32>,
    return
  }
  func.func @transform_0(%arg0: i32, %arg1: i32) -> (i32, i32, i32) {
    %c0_i32 = arith.constant 0 : i32
    %c0_i32_0 = arith.constant 0 : i32
    return %arg0, %c0_i32, %arg1 : i32, i32, i32
  }
  func.func @transform_1(%arg0: i32, %arg1: i32) -> (i32, i32, i32) {
    %c0_i32 = arith.constant 0 : i32
    %c0_i32_0 = arith.constant 0 : i32
    return %arg0, %arg1, %c0_i32 : i32, i32, i32
  }
}

</mosaic_0001>

<bundles_post_ra>
// kernel: tpu_custom_call.1
= control target key start
LH: loop header
LB: loop body
LE: loop exit
PB: predicated region body
PF: predicated region fallthrough
CT: control target
= control target key end

     0   :  { %s285_s0 = inlined_call_operand.vmem [shape: f32[2,128,64], index: 0, kind: input, shape index: {}]   ;;  %s286_s1 = inlined_call_operand.hbm [shape: f32[2,64,128], index: 1, kind: output, shape index: {}]  }
   0x1   :  { %v25_v0 = vld [vmem:[%s285_s0 + $0x80] sm:$0xff]  ;;  %v26_v2 = vld [vmem:[%s285_s0 + $0x88] sm:$0xff]  ;;  %v27_v4 = vld [vmem:[%s285_s0 + $0x90] sm:$0xff] }
   0x2   :  { %v9_v1 = vld [vmem:[%s285_s0] sm:$0xff]  ;;  %73 = vxpose.xlu1.b32.start [1/16] (narrow) %v25_v0, 64  ;;  %v10_v3 = vld [vmem:[%s285_s0 + $0x8] sm:$0xff]  ;;  %v11_v5 = vld [vmem:[%s285_s0 + $0x10] sm:$0xff] }
   0x3   :  { %41 = vxpose.xlu0.b32.start [1/16] (narrow) %v9_v1, 64  ;;  %v28_v6 = vld [vmem:[%s285_s0 + $0x98] sm:$0xff] }
   0x4   :  { %v12_v7 = vld [vmem:[%s285_s0 + $0x18] sm:$0xff] }
   0x6   :  { %74 = vxpose.xlu1.b32.cont [2/16] (narrow) %v26_v2, 64 }
   0x7   :  { %42 = vxpose.xlu0.b32.cont [2/16] (narrow) %v10_v3, 64 }
   0xa   :  { %75 = vxpose.xlu1.b32.cont [3/16] (narrow) %v27_v4, 64 }
   0xb   :  { %43 = vxpose.xlu0.b32.cont [3/16] (narrow) %v11_v5, 64 }
   0xc   :  { %6 = vsyncpa [#allocation3], 0  ;;  %v29_v8 = vld [vmem:[%s285_s0 + $0xa0] sm:$0xff]  ;;  %v30_v10 = vld [vmem:[%s285_s0 + $0xa8] sm:$0xff] }
   0xd   :  { %v13_v9 = vld [vmem:[%s285_s0 + $0x20] sm:$0xff]  ;;  %v14_v11 = vld [vmem:[%s285_s0 + $0x28] sm:$0xff]  ;;  %v31_v12 = vld [vmem:[%s285_s0 + $0xb0] sm:$0xff] }
   0xe   :  { %76 = vxpose.xlu1.b32.cont [4/16] (narrow) %v28_v6, 64  ;;  %v15_v13 = vld [vmem:[%s285_s0 + $0x30] sm:$0xff]  ;;  %v32_v14 = vld [vmem:[%s285_s0 + $0xb8] sm:$0xff]  ;;  %v33_v16 = vld [vmem:[%s285_s0 + $0xc0] sm:$0xff] }
   0xf   :  { %44 = vxpose.xlu0.b32.cont [4/16] (narrow) %v12_v7, 64  ;;  %v16_v15 = vld [vmem:[%s285_s0 + $0x38] sm:$0xff]  ;;  %v17_v17 = vld [vmem:[%s285_s0 + $0x40] sm:$0xff]  ;;  %v34_v18 = vld [vmem:[%s285_s0 + $0xc8] sm:$0xff] }
  0x10   :  { %v18_v19 = vld [vmem:[%s285_s0 + $0x48] sm:$0xff]  ;;  %v35_v20 = vld [vmem:[%s285_s0 + $0xd0] sm:$0xff]  ;;  %v36_v22 = vld [vmem:[%s285_s0 + $0xd8] sm:$0xff] }
  0x11   :  { %v19_v21 = vld [vmem:[%s285_s0 + $0x50] sm:$0xff]  ;;  %v20_v23 = vld [vmem:[%s285_s0 + $0x58] sm:$0xff]  ;;  %v37_v24 = vld [vmem:[%s285_s0 + $0xe0] sm:$0xff] }
  0x12   :  { %77 = vxpose.xlu1.b32.cont [5/16] (narrow) %v29_v8, 64  ;;  %v21_v25 = vld [vmem:[%s285_s0 + $0x60] sm:$0xff]  ;;  %v38_v26 = vld [vmem:[%s285_s0 + $0xe8] sm:$0xff]  ;;  %v39_v28 = vld [vmem:[%s285_s0 + $0xf0] sm:$0xff] }
  0x13   :  { %45 = vxpose.xlu0.b32.cont [5/16] (narrow) %v13_v9, 64  ;;  %v22_v27 = vld [vmem:[%s285_s0 + $0x68] sm:$0xff]  ;;  %v23_v29 = vld [vmem:[%s285_s0 + $0x70] sm:$0xff]  ;;  %v40_v30 = vld [vmem:[%s285_s0 + $0xf8] sm:$0xff] }
  0x14   :  { %v24_v31 = vld [vmem:[%s285_s0 + $0x78] sm:$0xff]  ;;  %s164_s0 = smov [#allocation2]  }
  0x15   :  { %s126_s12 = sshll.u32 %s164_s0, 4  ;;  %s127_s12 = int_to_ptr.vmem [resolvable:$true] %s126_s12 }
  0x16   :  { %78 = vxpose.xlu1.b32.cont [6/16] (narrow) %v30_v10, 64  ;;  %s140_s13 = scalar_lea.vmem %s127_s12, 2048  ;;  %p145_p1 = scmp.lt.s32.totalorder %s127_s12, %s127_s12 }
  0x17   :  { %46 = vxpose.xlu0.b32.cont [6/16] (narrow) %v14_v11, 64  ;;  %p141_p0 = scmp.ne.s32.totalorder %s127_s12, %s140_s13  ;;  %p146_p2 = scmp.lt.s32.totalorder %s140_s13, %s140_s13 }
  0x19   :  { %p147_p3 = por %p146_p2, %p145_p1 }
  0x1a   :  { %79 = vxpose.xlu1.b32.cont [7/16] (narrow) %v31_v12, 64 }
  0x1b   :  { %47 = vxpose.xlu0.b32.cont [7/16] (narrow) %v15_v13, 64  ;;  %p148_p4 = pnand %p147_p3, %p141_p0 }
  0x1e   :  { %80 = vxpose.xlu1.b32.cont [8/16] (narrow) %v32_v14, 64 }
  0x1f   :  { %48 = vxpose.xlu0.b32.cont [8/16] (narrow) %v16_v15, 64 }
  0x22   :  { %81 = vxpose.xlu1.b32.cont [9/16] (narrow) %v33_v16, 64 }
  0x23   :  { %49 = vxpose.xlu0.b32.cont [9/16] (narrow) %v17_v17, 64 }
  0x26   :  { %82 = vxpose.xlu1.b32.cont [10/16] (narrow) %v34_v18, 64 }
  0x27   :  { %50 = vxpose.xlu0.b32.cont [10/16] (narrow) %v18_v19, 64 }
  0x2a   :  { %83 = vxpose.xlu1.b32.cont [11/16] (narrow) %v35_v20, 64 }
  0x2b   :  { %51 = vxpose.xlu0.b32.cont [11/16] (narrow) %v19_v21, 64 }
  0x2e   :  { %84 = vxpose.xlu1.b32.cont [12/16] (narrow) %v36_v22, 64 }
  0x2f   :  { %52 = vxpose.xlu0.b32.cont [12/16] (narrow) %v20_v23, 64 }
  0x32   :  { %85 = vxpose.xlu1.b32.cont [13/16] (narrow) %v37_v24, 64 }
  0x33   :  { %53 = vxpose.xlu0.b32.cont [13/16] (narrow) %v21_v25, 64 }
  0x36   :  { %86 = vxpose.xlu1.b32.cont [14/16] (narrow) %v38_v26, 64 }
  0x37   :  { %54 = vxpose.xlu0.b32.cont [14/16] (narrow) %v22_v27, 64 }
  0x3a   :  { %87 = vxpose.xlu1.b32.cont [15/16] (narrow) %v39_v28, 64 }
  0x3b   :  { %55 = vxpose.xlu0.b32.cont [15/16] (narrow) %v23_v29, 64 }
  0x3e   :  { %88 = vxpose.xlu1.b32.end [16/16] (narrow) %v40_v30, 64 }
  0x3f   :  { %56 = vxpose.xlu0.b32.end [16/16] (narrow) %v24_v31, 64 }
  0x82   :  { %v89_v32 = vpop.trf.xlu1 }
  0x83   :  { %v57_v33 = vpop.trf.xlu0  ;;  %113 = vst [vmem:[#allocation2 + $0x40] sm:$0xff] %v89_v32 }
  0x84   :  { %105 = vst [vmem:[#allocation2] sm:$0xff] %v57_v33 }
  0x86   :  { %v90_v34 = vpop.trf.xlu1 }
  0x87   :  { %v58_v35 = vpop.trf.xlu0  ;;  %114 = vst [vmem:[#allocation2 + $0x48] sm:$0xff] %v90_v34 }
  0x88   :  { %106 = vst [vmem:[#allocation2 + $0x8] sm:$0xff] %v58_v35 }
  0x8a   :  { %v91_v36 = vpop.trf.xlu1 }
  0x8b   :  { %v59_v37 = vpop.trf.xlu0  ;;  %115 = vst [vmem:[#allocation2 + $0x50] sm:$0xff] %v91_v36 }
  0x8c   :  { %107 = vst [vmem:[#allocation2 + $0x10] sm:$0xff] %v59_v37 }
  0x8e   :  { %v92_v38 = vpop.trf.xlu1 }
  0x8f   :  { %v60_v39 = vpop.trf.xlu0  ;;  %116 = vst [vmem:[#allocation2 + $0x58] sm:$0xff] %v92_v38 }
  0x90   :  { %108 = vst [vmem:[#allocation2 + $0x18] sm:$0xff] %v60_v39 }
  0x92   :  { %v93_v40 = vpop.trf.xlu1 }
  0x93   :  { %v61_v41 = vpop.trf.xlu0  ;;  %117 = vst [vmem:[#allocation2 + $0x60] sm:$0xff] %v93_v40 }
  0x94   :  { %109 = vst [vmem:[#allocation2 + $0x20] sm:$0xff] %v61_v41 }
  0x96   :  { %v94_v42 = vpop.trf.xlu1 }
  0x97   :  { %v62_v43 = vpop.trf.xlu0  ;;  %118 = vst [vmem:[#allocation2 + $0x68] sm:$0xff] %v94_v42 }
  0x98   :  { %110 = vst [vmem:[#allocation2 + $0x28] sm:$0xff] %v62_v43 }
  0x9a   :  { %v95_v44 = vpop.trf.xlu1 }
  0x9b   :  { %v63_v45 = vpop.trf.xlu0  ;;  %119 = vst [vmem:[#allocation2 + $0x70] sm:$0xff] %v95_v44 }
  0x9c   :  { %111 = vst [vmem:[#allocation2 + $0x30] sm:$0xff] %v63_v45 }
  0x9e   :  { %v96_v46 = vpop.trf.xlu1 }
  0x9f   :  { %v64_v47 = vpop.trf.xlu0  ;;  %120 = vst [vmem:[#allocation2 + $0x78] sm:$0xff] %v96_v46 }
  0xa0   :  { %112 = vst [vmem:[#allocation2 + $0x38] sm:$0xff] %v64_v47 }
  0xa1   :  { %151 = shalt.err (!%p148_p4)
}
  0xa2   :  { %s152_s16 = scalar_lea.hbm %s286_s1, 2048 }
  0xa3   :  { %p153_p5 = scmp.ne.s32.totalorder %s286_s1, %s152_s16  ;;  %p156_p6 = scmp.lt.u32.totalorder %s152_s16, %s286_s1 }
  0xa5   :  { %p158_p7 = pnand %p156_p6, %p153_p5 }
  0xa7   :  { %161 = shalt.err (!%p158_p7)
}
  0xa8   :  { %s165_s21 = smov 128   ;;  %s166_s22 = smov 8  }
  0xa9   :  { %132 = dma.vmem_to_hbm [thread:$0]  %s127_s12, 2048, %s286_s1, [#allocation3], %s165_s21, %s165_s21, %s166_s22  }
  0xaa   :  { %162 = dma.done.wait [#allocation3], 2048  }
  0xab   :  { %163 = vsyncadd [#allocation3], 4294965248 }
  0xac   :  { %136 = vsyncpa [#allocation3], 1 }

</bundles_post_ra>
